<compile_context>
chip_gen: v7x
topology: tpu7x:2x2x1
jax: 0.10.0
libtpu: 0.0.40
codegen_flags: <defaults>
</compile_context>

<pallas_src>
import functools

import jax
import jax.numpy as jnp
import numpy as np
from jax.experimental import pallas as pl
from jax.experimental.pallas import tpu as pltpu


def _filter_kernel(x_ref, kcat_ref, o1_ref, o2_ref, *, H):
    x = x_ref[...]                                        # (tm, H) f32 row tile
    # Single MXU push: x_bf16 @ [K1 | K2]  ->  (tm, 2H) f32 accumulators.
    y = jnp.dot(x.astype(jnp.bfloat16), kcat_ref[...],
                preferred_element_type=jnp.float32)
    o1_ref[...] = y[:, :H] + x                            # x@K1 + residual (exact f32)
    o2_ref[...] = y[:, H:].astype(o2_ref.dtype)           # x@K2 (bf16 side stream)


@functools.lru_cache(maxsize=None)
def _rfft_basis(H):
    """Forward/inverse real-DFT bases along the hidden axis (ortho scale)."""
    Hh = H // 2 + 1
    ang = 2.0 * np.pi * np.arange(Hh)[:, None] * np.arange(H)[None, :] / H
    s = 1.0 / np.sqrt(H)
    Br = np.cos(ang) * s                       # Re B[m,h],  B = e^{-i ang}
    Bi = -np.sin(ang) * s                      # Im B[m,h]
    c = np.full((Hh, 1), 2.0)                  # Hermitian duplication weights
    c[0, 0] = 1.0
    if H % 2 == 0:
        c[-1, 0] = 1.0                         # Nyquist bin
    Dr = np.cos(ang) * c * s                   # Re D[m,h],  D = c*e^{+i ang}
    Di = np.sin(ang) * c * s                   # Im D[m,h]
    f32 = lambda a: jnp.asarray(a, jnp.float32)
    return f32(Br), f32(Bi), f32(Dr), f32(Di)


def _filter_matrices(complex_weight, H):
    """Fold the per-frequency-bin weight into two H x H real matrices."""
    Br, Bi, Dr, Di = _rfft_basis(H)
    wr = complex_weight[0, :, 0].astype(jnp.float32)[:, None]
    wi = complex_weight[0, :, 1].astype(jnp.float32)[:, None]
    a = 0.5 * (wr + wi)
    b = 0.5 * (wr - wi)
    hi = jax.lax.Precision.HIGHEST             # tiny (H,Hh)@(Hh,H) precompute
    K1 = jnp.dot(Br.T, a * Dr, precision=hi) - jnp.dot(Bi.T, a * Di, precision=hi)
    K2 = jnp.dot(Br.T, b * Dr, precision=hi) + jnp.dot(Bi.T, b * Di, precision=hi)
    return K1, K2


def _choose_tm(S):
    """Row tile: multiple of 16 (legal partial blocks for f32 & bf16 refs),
    biggest candidate with <~33% padded-row waste, and >=2 grid steps when S
    is large enough to feed both v7x TensorCores."""
    tm = 16
    for cand in (512, 256, 128, 64, 32, 16):
        waste = pl.cdiv(S, cand) * cand - S
        if waste <= max(S // 3, 8):
            tm = cand
            break
    if S >= 256 and pl.cdiv(S, tm) < 2:        # keep both v7x cores busy
        tm = max(128, -(-(S // 2) // 16) * 16)
    return tm


def _kcat_spec(H):
    """Resident [K1|K2] operand; single-buffered once big enough to matter."""
    idx = lambda i: (0, 0)
    if 8 * H * H <= (8 << 20):                 # double-buffered bf16 K is tiny
        return pl.BlockSpec((H, 2 * H), idx)
    try:
        return pl.BlockSpec((H, 2 * H), idx,
                            pipeline_mode=pl.Buffered(buffer_count=1))
    except (TypeError, AttributeError):        # older jax without pipeline_mode
        return pl.BlockSpec((H, 2 * H), idx)


def _vmem_limit(tm, H):
    """Size-derived VMEM cap (never hard-code the physical maximum)."""
    need = 2 * tm * H * 4                      # x row stream (double buffered, f32)
    need += 2 * tm * H * 4                     # out1 (double buffered, f32)
    need += 2 * tm * H * 2                     # out2 (double buffered, bf16)
    kbuf = H * (2 * H) * 2                     # [K1|K2] bf16
    need += kbuf if 8 * H * H > (8 << 20) else 2 * kbuf
    need = int(need * 1.25) + (4 << 20)        # headroom for compiler temporaries
    try:
        phys = pltpu.get_tpu_info().vmem_capacity_bytes
    except Exception:
        phys = 64 << 20                        # safe on every generation
    return int(max(32 << 20, min(need, int(phys * 0.85))))


@jax.jit
def filter_layer(x, complex_weight):
    """Pallas implementation of FilterLayer.forward (eval mode)."""
    S, H = x.shape
    assert complex_weight.shape == (1, H // 2 + 1, 2)
    x = x.astype(jnp.float32)

    K1, K2 = _filter_matrices(complex_weight, H)
    kcat = jnp.concatenate([K1, K2], axis=1).astype(jnp.bfloat16)   # (H, 2H)

    tm = _choose_tm(S)
    grid = (pl.cdiv(S, tm),)
    row_spec = pl.BlockSpec((tm, H), lambda i: (i, 0))

    out1, y2 = pl.pallas_call(
        functools.partial(_filter_kernel, H=H),
        grid=grid,
        in_specs=[row_spec, _kcat_spec(H)],
        out_specs=(row_spec, row_spec),
        out_shape=(jax.ShapeDtypeStruct((S, H), jnp.float32),    # x@K1 + x
                   jax.ShapeDtypeStruct((S, H), jnp.bfloat16)),  # x@K2
        compiler_params=pltpu.CompilerParams(
            dimension_semantics=("parallel",),
            vmem_limit_bytes=_vmem_limit(tm, H),
        ),
        cost_estimate=pl.CostEstimate(
            flops=4 * S * H * H + 2 * S * H,
            transcendentals=0,
            bytes_accessed=4 * S * H + 4 * S * H + 2 * S * H + 4 * H * H,
        ),
    )(x, kcat)

    # Fused epilogue: out = (x@K1 + x) + flip_rows(x@K2), flip: j -> (-j) mod S.
    # (flip_rows(x) @ K2 == flip_rows(x @ K2) because the flip is a row perm.)
    flip_idx = np.asarray((-np.arange(S)) % S, dtype=np.int32)
    return out1 + jnp.take(y2, flip_idx, axis=0).astype(jnp.float32)


def filter_layer_ref(x, complex_weight):
    """Pure-JAX reference mirroring the torch semantics."""
    S, H = x.shape
    X = jnp.fft.rfft2(x, norm="ortho")
    wr = complex_weight[:, :, 0]
    wi = complex_weight[:, :, 1]
    Y = X.real * wr + 1j * (X.imag * wi)       # elementwise, like x * weight
    out = jnp.fft.irfft2(Y, s=(S, H), norm="ortho")
    return out + x


if __name__ == "__main__":
    S, H = 8, 32                               # seq_len, config.hidden_layer
    key = jax.random.PRNGKey(0)
    kx, kw = jax.random.split(key)
    x = jax.random.normal(kx, (S, H), dtype=jnp.float32)
    # deterministic init of nn.Parameter(torch.randn((1, H//2+1, 2)) * 0.02)
    complex_weight = 0.02 * jax.random.normal(kw, (1, H // 2 + 1, 2), dtype=jnp.float32)

    out = jax.block_until_ready(filter_layer(x, complex_weight))
    ref = filter_layer_ref(x, complex_weight)

    assert out.shape == (S, H)
    np.testing.assert_allclose(np.asarray(out), np.asarray(ref), rtol=2e-3, atol=2e-3)
    print("KERNEL_OK")
</pallas_src>

<mosaic_0001>
module attributes {stable_mosaic.version = 11 : i64} {
  func.func @_filter_kernel(%arg0: i32, %arg1: memref<16x32xf32, #tpu.memory_space<vmem>>, %arg2: memref<32x64xbf16, #tpu.memory_space<vmem>>, %arg3: memref<16x32xf32, #tpu.memory_space<vmem>>, %arg4: memref<16x32xbf16, #tpu.memory_space<vmem>>) attributes {dimension_semantics = [#tpu.dimension_semantics<parallel>], iteration_bounds = array<i64: 1>, scalar_prefetch = 0 : i64, scratch_operands = 0 : i64, tpu.core_type = #tpu.core_type<tc>, window_params = [{transform_indices = @transform_0, window_bounds = array<i64: 16, 32>}, {pipeline_mode = #tpu.pipeline_mode<synchronous>, transform_indices = @transform_1, window_bounds = array<i64: 32, 64>}, {transform_indices = @transform_2, window_bounds = array<i64: 16, 32>}, {transform_indices = @transform_3, window_bounds = array<i64: 16, 32>}]} {
    %c0 = arith.constant 0 : index
    %c0_0 = arith.constant 0 : index
    %0 = vector.load %arg1[%c0, %c0_0] : memref<16x32xf32, #tpu.memory_space<vmem>>, vector<16x32xf32>
    %1 = arith.truncf %0 : vector<16x32xf32> to vector<16x32xbf16>
    %c0_1 = arith.constant 0 : index
    %c0_2 = arith.constant 0 : index
    %2 = vector.load %arg2[%c0_1, %c0_2] : memref<32x64xbf16, #tpu.memory_space<vmem>>, vector<32x64xbf16>
    %cst = arith.constant dense<0.000000e+00> : vector<16x64xf32>
    %3 = tpu.matmul %1, %2, %cst {dimension_numbers = #tpu.dot_dimension_numbers<[1], [0], [0], [1], [0, 0, 1, 1], [], []>} : vector<16x32xbf16>, vector<32x64xbf16>, vector<16x64xf32> -> vector<16x64xf32>
    %4 = vector.extract_strided_slice %3 {offsets = [0, 0], sizes = [16, 32], strides = [1, 1]} : vector<16x64xf32> to vector<16x32xf32>
    %5 = arith.addf %4, %0 : vector<16x32xf32>
    %c0_3 = arith.constant 0 : index
    %c0_4 = arith.constant 0 : index
    %6 = vector.load %arg3[%c0_3, %c0_4] : memref<16x32xf32, #tpu.memory_space<vmem>>, vector<16x32xf32>
    tpu.vector_store %arg3[%c0_3, %c0_4], %5 {strides = array<i32>} : memref<16x32xf32, #tpu.memory_space<vmem>>, vector<16x32xf32>,
    %7 = vector.extract_strided_slice %3 {offsets = [0, 32], sizes = [16, 32], strides = [1, 1]} : vector<16x64xf32> to vector<16x32xf32>
    %8 = arith.truncf %7 : vector<16x32xf32> to vector<16x32xbf16>
    %c0_5 = arith.constant 0 : index
    %c0_6 = arith.constant 0 : index
    %9 = vector.load %arg4[%c0_5, %c0_6] : memref<16x32xbf16, #tpu.memory_space<vmem>>, vector<16x32xbf16>
    tpu.vector_store %arg4[%c0_5, %c0_6], %8 {strides = array<i32>} : memref<16x32xbf16, #tpu.memory_space<vmem>>, vector<16x32xbf16>,
    return
  }
  func.func @transform_0(%arg0: i32) -> (i32, i32) {
    %c0_i32 = arith.constant 0 : i32
    %c0_i32_0 = arith.constant 0 : i32
    return %arg0, %c0_i32 : i32, i32
  }
  func.func @transform_1(%arg0: i32) -> (i32, i32) {
    %c0_i32 = arith.constant 0 : i32
    %c0_i32_0 = arith.constant 0 : i32
    %c0_i32_1 = arith.constant 0 : i32
    return %c0_i32, %c0_i32_0 : i32, i32
  }
  func.func @transform_2(%arg0: i32) -> (i32, i32) {
    %c0_i32 = arith.constant 0 : i32
    %c0_i32_0 = arith.constant 0 : i32
    return %arg0, %c0_i32 : i32, i32
  }
  func.func @transform_3(%arg0: i32) -> (i32, i32) {
    %c0_i32 = arith.constant 0 : i32
    %c0_i32_0 = arith.constant 0 : i32
    return %arg0, %c0_i32 : i32, i32
  }
}

</mosaic_0001>

<bundles_post_ra>
// kernel: filter_layer.1
= control target key start
LH: loop header
LB: loop body
LE: loop exit
PB: predicated region body
PF: predicated region fallthrough
CT: control target
= control target key end

     0   :  { %v199_v1 = vmov 0.0   ;;  %vm200_vm0 = vmmov 0   ;;  %vm33_vm1 = vcmask 261120   ;;  %vm94_vm2 = vcmask 257024   ;;  %s240_s0 = inlined_call_operand.vmem [shape: f32[8,32], index: 0, kind: input, shape index: {}]   ;;  %s241_s1 = inlined_call_operand.vmem [shape: bf16[32,64], index: 1, kind: input, shape index: {}]   ;;  %s242_s2 = inlined_call_operand.vmem [shape: f32[8,32], index: 2, kind: output, shape index: {0}]   ;;  %s243_s3 = inlined_call_operand.vmem [shape: bf16[8,32], index: 3, kind: output, shape index: {1}]  }
   0x1   :  { %v197_v0 = vld [vmem:[%s241_s1] sm:$0xff]   ;;  %186 = vmatprep.subr.bf16.mxu0 %v199_v1  ;;  %v198_v2 = vld [vmem:[%s241_s1 + $0x8] sm:$0xff]   ;;  %190 = vmatprep.mubr.msk.bf16.mxu0 %vm200_vm0, %v199_v1  ;;  %s201_s1 = smov 96  }
   0x2   :  { %187 = vmatpush3.bf16.msra.mxu0 %v197_v0  ;;  %v14_v3 = vld [vmem:[%s240_s0] sm:$0xff]  ;;  %v15_v4 = vld [vmem:[%s240_s0 + $0x8] sm:$0xff] }
   0x3   :  { %188 = vmatprep.subr.bf16.mxu0 %v199_v1  ;;  %v16_v5 = vpack.c.bf16 %v15_v4, %v14_v3 }
   0x6   :  { %189 = vmatpush3.bf16.msra.mxu0 %v198_v2 }
   0x9   :  { %191 = vmatmul.mubr.msk.bf16.vlgmr.msra.gmra.mrb[0].mxu0 %vm33_vm1, %v16_v5 }
  0xdc   :  { %v71_v6 = vpop.f32.mrb[0].mxu0 }
  0xdd   :  { %v78_v7 = vadd.f32 %v71_v6, %v14_v3  ;;  %v192_v8 = vpop.f32.mrb[1].mxu0  ;;  %v181_v9 = vpack.c.bf16 %v71_v6, %v71_v6 }
  0xde   :  { %v74_v10 = vpop.f32.mrb[2].mxu0 }
  0xdf   :  { %80 = vst.msk [vmem:[#allocation2] sm:$0xff] %vm33_vm1, %v78_v7  ;;  %88 = vrot.lane.b32.xlu0 %v181_v9, %s201_s1  ;;  %v193_v11 = vpop.f32.mrb[3].mxu0  ;;  %v182_v12 = vpack.c.bf16 %v74_v10, %v74_v10 }
  0xe3   :  { %90 = vrot.lane.b32.xlu0 %v182_v12, %s201_s1 }
  0xe6   :  { %v126_v13 = vld [vmem:[#allocation2] sm:$0xff] }
  0xe7   :  { %127 = vst [vmem:[%s242_s2] sm:$0xff] %v126_v13 }
 0x151   :  { %v89_v14 = vpop.permute.xlu0 %88 }
 0x152   :  { %95 = vst.msk [vmem:[#allocation3] sm:$0xf] %vm94_vm2, %v89_v14 }
 0x155   :  { %v91_v15 = vpop.permute.xlu0 %90 }
 0x159   :  { %v148_v16 = vld [vmem:[#allocation3] sm:$0xf] }
 0x15a   :  { %149 = vst [vmem:[%s243_s3] sm:$0xf] %v148_v16 }

</bundles_post_ra>
